<compile_context>
chip_gen: v6e
topology: v6e:2x2x1
jax: 0.10.0
libtpu: 0.0.40
codegen_flags: <defaults>
</compile_context>

<pallas_src>
import functools

import jax
import jax.numpy as jnp
from jax.experimental import pallas as pl
from jax.experimental.pallas import tpu as pltpu


def _attribute_net_kernel(x_ref, w1_ref, b1_ref, w2_ref, b2_ref, o_ref):
    # fc1: cast streamed f32 x tile to bf16 (VPU), matmul on MXU, f32 accumulate.
    x = x_ref[...].astype(w1_ref.dtype)
    h = jnp.dot(x, w1_ref[...], preferred_element_type=jnp.float32)
    h = jnp.maximum(h + b1_ref[...], 0.0)                  # (TB, H) + (1, H)
    # fc2: feed MXU in bf16 again, f32 accumulate.
    y = jnp.dot(h.astype(w2_ref.dtype), w2_ref[...],
                preferred_element_type=jnp.float32)
    y = jnp.maximum(y + b2_ref[...], 0.0)                  # (TB, O) + (1, O)
    o_ref[...] = y.astype(o_ref.dtype)


def prepare_params(w1, b1, w2, b2, *, compute_dtype=jnp.bfloat16):
    """One-time parameter prep (transpose / cast), hoisted off the hot path.
    nn.Linear layout: w1: (hidden, input), b1: (hidden,), w2: (output, hidden),
    b2: (output,). Returns a dict of ARRAYS ONLY (safe to pass through jit)."""
    hidden = w1.shape[0]
    out_size = w2.shape[0]
    w1_t = jnp.asarray(w1, compute_dtype).T                # (in, hidden)
    b1_2d = jnp.asarray(b1, jnp.float32).reshape(1, hidden)
    w2_t = jnp.asarray(w2, compute_dtype).T                # (hidden, out)
    b2_2d = jnp.asarray(b2, jnp.float32).reshape(1, out_size)
    return {"w1_t": w1_t, "b1": b1_2d, "w2_t": w2_t, "b2": b2_2d}


@functools.partial(jax.jit, static_argnames=("block_rows",))
def attribute_network(x, params, *, block_rows=4096):
    """x: (B, input_size) f32; params from prepare_params().
    Returns (B, output_size) f32 (bf16-level accuracy: MXU operands are bf16)."""
    w1_t, b1_2d = params["w1_t"], params["b1"]
    w2_t, b2_2d = params["w2_t"], params["b2"]

    B, in_size = x.shape
    hidden = w1_t.shape[1]
    out_size = w2_t.shape[1]

    x = jnp.asarray(x, jnp.float32)

    # Batch tile: large (amortize ~0.35us/step), multiple of 32 (sublane-pack
    # proof for any dtype), capped at ceil(B/2) so nb >= 2 when B is big
    # (both v7x TensorCores get work via the "parallel" axis), and capped at
    # block_rows (default 4096 keeps VMEM well inside v5e's default limit).
    half = -(-B // 2)
    tb = max(32, ((half + 31) // 32) * 32)
    tb = min(tb, block_rows)
    nb = pl.cdiv(B, tb)
    b_pad = nb * tb
    if b_pad != B:
        x = jnp.pad(x, ((0, b_pad - B), (0, 0)))

    out = pl.pallas_call(
        _attribute_net_kernel,
        out_shape=jax.ShapeDtypeStruct((b_pad, out_size), jnp.float32),
        grid_spec=pltpu.PrefetchScalarGridSpec(
            num_scalar_prefetch=0,
            grid=(nb,),
            in_specs=[
                pl.BlockSpec((tb, in_size), lambda i: (i, 0)),      # x: streamed
                pl.BlockSpec((in_size, hidden), lambda i: (0, 0)),  # W1^T: resident
                pl.BlockSpec((1, hidden), lambda i: (0, 0)),        # b1: resident
                pl.BlockSpec((hidden, out_size), lambda i: (0, 0)), # W2^T: resident
                pl.BlockSpec((1, out_size), lambda i: (0, 0)),      # b2: resident
            ],
            out_specs=pl.BlockSpec((tb, out_size), lambda i: (i, 0)),
        ),
        compiler_params=pltpu.CompilerParams(
            dimension_semantics=("parallel",),
        ),
    )(x, w1_t, b1_2d, w2_t, b2_2d)

    return out[:B]   # row slice only; no lane-dim slice / relayout


def _reference(x, w1, b1, w2, b2):
    h = jnp.maximum(x @ w1.T + b1, 0.0)
    return jnp.maximum(h @ w2.T + b2, 0.0)


if __name__ == "__main__":
    # AttributeNetwork(input_size=16, hidden_size=32, output_size=24), batch of 8.
    B, input_size, hidden_size, output_size = 8, 16, 32, 24

    key = jax.random.PRNGKey(0)
    kx, kw1, kb1, kw2, kb2 = jax.random.split(key, 5)
    x = jax.random.normal(kx, (B, input_size), dtype=jnp.float32)
    w1 = jax.random.normal(kw1, (hidden_size, input_size), dtype=jnp.float32) * 0.1
    b1 = jax.random.normal(kb1, (hidden_size,), dtype=jnp.float32) * 0.1
    w2 = jax.random.normal(kw2, (output_size, hidden_size), dtype=jnp.float32) * 0.1
    b2 = jax.random.normal(kb2, (output_size,), dtype=jnp.float32) * 0.1

    params = prepare_params(w1, b1, w2, b2)          # hoisted out of the hot path

    out = attribute_network(x, params)
    out = jax.block_until_ready(out)
    ref = _reference(x, w1, b1, w2, b2)
    assert out.shape == (B, output_size)
    assert jnp.allclose(out, ref, atol=3e-2, rtol=3e-2), "mismatch vs reference (B=8)"

    # Exercise the multi-step grid + batch-padding path with a modest batch.
    B2 = 200
    x2 = jax.random.normal(jax.random.PRNGKey(1), (B2, input_size), dtype=jnp.float32)
    out2 = jax.block_until_ready(attribute_network(x2, params, block_rows=64))
    ref2 = _reference(x2, w1, b1, w2, b2)
    assert out2.shape == (B2, output_size)
    assert jnp.allclose(out2, ref2, atol=3e-2, rtol=3e-2), "mismatch vs reference (B=200)"

    print("KERNEL_OK")
</pallas_src>

<mosaic_0001>
module attributes {stable_mosaic.version = 11 : i64} {
  func.func @_attribute_net_kernel(%arg0: i32, %arg1: memref<32x16xf32, #tpu.memory_space<vmem>>, %arg2: memref<16x32xbf16, #tpu.memory_space<vmem>>, %arg3: memref<1x32xf32, #tpu.memory_space<vmem>>, %arg4: memref<32x24xbf16, #tpu.memory_space<vmem>>, %arg5: memref<1x24xf32, #tpu.memory_space<vmem>>, %arg6: memref<32x24xf32, #tpu.memory_space<vmem>>) attributes {dimension_semantics = [#tpu.dimension_semantics<parallel>], iteration_bounds = array<i64: 1>, scalar_prefetch = 0 : i64, scratch_operands = 0 : i64, tpu.core_type = #tpu.core_type<tc>, window_params = [{transform_indices = @transform_0, window_bounds = array<i64: 32, 16>}, {pipeline_mode = #tpu.pipeline_mode<synchronous>, transform_indices = @transform_1, window_bounds = array<i64: 16, 32>}, {pipeline_mode = #tpu.pipeline_mode<synchronous>, transform_indices = @transform_2, window_bounds = array<i64: 1, 32>}, {pipeline_mode = #tpu.pipeline_mode<synchronous>, transform_indices = @transform_3, window_bounds = array<i64: 32, 24>}, {pipeline_mode = #tpu.pipeline_mode<synchronous>, transform_indices = @transform_4, window_bounds = array<i64: 1, 24>}, {transform_indices = @transform_5, window_bounds = array<i64: 32, 24>}]} {
    %c0 = arith.constant 0 : index
    %c0_0 = arith.constant 0 : index
    %0 = vector.load %arg1[%c0, %c0_0] : memref<32x16xf32, #tpu.memory_space<vmem>>, vector<32x16xf32>
    %1 = arith.truncf %0 : vector<32x16xf32> to vector<32x16xbf16>
    %c0_1 = arith.constant 0 : index
    %c0_2 = arith.constant 0 : index
    %2 = vector.load %arg2[%c0_1, %c0_2] : memref<16x32xbf16, #tpu.memory_space<vmem>>, vector<16x32xbf16>
    %cst = arith.constant dense<0.000000e+00> : vector<32x32xf32>
    %3 = tpu.matmul %1, %2, %cst {dimension_numbers = #tpu.dot_dimension_numbers<[1], [0], [0], [1], [0, 0, 1, 1], [], []>} : vector<32x16xbf16>, vector<16x32xbf16>, vector<32x32xf32> -> vector<32x32xf32>
    %c0_3 = arith.constant 0 : index
    %c0_4 = arith.constant 0 : index
    %4 = vector.load %arg3[%c0_3, %c0_4] : memref<1x32xf32, #tpu.memory_space<vmem>>, vector<1x32xf32>
    %5 = vector.broadcast %4 : vector<1x32xf32> to vector<32x32xf32>
    %6 = arith.addf %3, %5 : vector<32x32xf32>
    %cst_5 = arith.constant 0.000000e+00 : f32
    %7 = vector.broadcast %cst_5 : f32 to vector<32x32xf32>
    %8 = arith.maximumf %6, %7 : vector<32x32xf32>
    %9 = arith.truncf %8 : vector<32x32xf32> to vector<32x32xbf16>
    %c0_6 = arith.constant 0 : index
    %c0_7 = arith.constant 0 : index
    %10 = vector.load %arg4[%c0_6, %c0_7] : memref<32x24xbf16, #tpu.memory_space<vmem>>, vector<32x24xbf16>
    %cst_8 = arith.constant dense<0.000000e+00> : vector<32x24xf32>
    %11 = tpu.matmul %9, %10, %cst_8 {dimension_numbers = #tpu.dot_dimension_numbers<[1], [0], [0], [1], [0, 0, 1, 1], [], []>} : vector<32x32xbf16>, vector<32x24xbf16>, vector<32x24xf32> -> vector<32x24xf32>
    %c0_9 = arith.constant 0 : index
    %c0_10 = arith.constant 0 : index
    %12 = vector.load %arg5[%c0_9, %c0_10] : memref<1x24xf32, #tpu.memory_space<vmem>>, vector<1x24xf32>
    %13 = vector.broadcast %12 : vector<1x24xf32> to vector<32x24xf32>
    %14 = arith.addf %11, %13 : vector<32x24xf32>
    %cst_11 = arith.constant 0.000000e+00 : f32
    %15 = vector.broadcast %cst_11 : f32 to vector<32x24xf32>
    %16 = arith.maximumf %14, %15 : vector<32x24xf32>
    %c0_12 = arith.constant 0 : index
    %c0_13 = arith.constant 0 : index
    %17 = vector.load %arg6[%c0_12, %c0_13] : memref<32x24xf32, #tpu.memory_space<vmem>>, vector<32x24xf32>
    tpu.vector_store %arg6[%c0_12, %c0_13], %16 {strides = array<i32>} : memref<32x24xf32, #tpu.memory_space<vmem>>, vector<32x24xf32>,
    return
  }
  func.func @transform_0(%arg0: i32) -> (i32, i32) {
    %c0_i32 = arith.constant 0 : i32
    %c0_i32_0 = arith.constant 0 : i32
    return %arg0, %c0_i32 : i32, i32
  }
  func.func @transform_1(%arg0: i32) -> (i32, i32) {
    %c0_i32 = arith.constant 0 : i32
    %c0_i32_0 = arith.constant 0 : i32
    %c0_i32_1 = arith.constant 0 : i32
    return %c0_i32, %c0_i32_0 : i32, i32
  }
  func.func @transform_2(%arg0: i32) -> (i32, i32) {
    %c0_i32 = arith.constant 0 : i32
    %c0_i32_0 = arith.constant 0 : i32
    %c0_i32_1 = arith.constant 0 : i32
    return %c0_i32, %c0_i32_0 : i32, i32
  }
  func.func @transform_3(%arg0: i32) -> (i32, i32) {
    %c0_i32 = arith.constant 0 : i32
    %c0_i32_0 = arith.constant 0 : i32
    %c0_i32_1 = arith.constant 0 : i32
    return %c0_i32, %c0_i32_0 : i32, i32
  }
  func.func @transform_4(%arg0: i32) -> (i32, i32) {
    %c0_i32 = arith.constant 0 : i32
    %c0_i32_0 = arith.constant 0 : i32
    %c0_i32_1 = arith.constant 0 : i32
    return %c0_i32, %c0_i32_0 : i32, i32
  }
  func.func @transform_5(%arg0: i32) -> (i32, i32) {
    %c0_i32 = arith.constant 0 : i32
    %c0_i32_0 = arith.constant 0 : i32
    return %arg0, %c0_i32 : i32, i32
  }
}

</mosaic_0001>

<bundles_post_ra>
// kernel: attribute_network.1
= control target key start
LH: loop header
LB: loop body
LE: loop exit
PB: predicated region body
PF: predicated region fallthrough
CT: control target
= control target key end

     0   :  { %vm42_vm0 = vcmask 130048   ;;  %vm127_vm1 = vcmask 261120   ;;  %vm187_vm2 = vcmask 195584   ;;  %s298_s1 = inlined_call_operand.vmem [shape: bf16[16,32], index: 1, kind: input, shape index: {}]   ;;  %s299_s0 = inlined_call_operand.vmem [shape: f32[32,16], index: 0, kind: input, shape index: {}]   ;;  %s300_s3 = inlined_call_operand.vmem [shape: bf16[32,24], index: 3, kind: input, shape index: {}]   ;;  %s301_s2 = inlined_call_operand.vmem [shape: f32[1,32], index: 2, kind: input, shape index: {}]   ;;  %s302_s4 = inlined_call_operand.vmem [shape: f32[1,24], index: 4, kind: input, shape index: {}]   ;;  %s303_s5 = inlined_call_operand.vmem [shape: f32[32,24], index: 5, kind: output, shape index: {}]  }
   0x1   :  { %v226_v0 = vld [vmem:[%s298_s1] sm:$0xff]   ;;  %v22_v2 = vld [vmem:[%s299_s0 + $0x8] sm:$0xff]  ;;  %v23_v3 = vld [vmem:[%s299_s0 + $0x10] sm:$0xff] }
   0x2   :  { %v21_v1 = vld [vmem:[%s299_s0] sm:$0xff]  ;;  %212 = vmatprep.subr.bf16.mxu0 %v226_v0  ;;  %v24_v5 = vld [vmem:[%s299_s0 + $0x18] sm:$0xff]  ;;  %v227_v7 = vld [vmem:[%s300_s3 + $0x8] sm:$0xff]  }
   0x3   :  { %v25_v4 = vpack.c.bf16 %v22_v2, %v21_v1  ;;  %213 = vmatpush3.bf16.msra.mxu0 %v226_v0  ;;  %v26_v6 = vpack.c.bf16 %v24_v5, %v23_v3  ;;  %218 = vmatprep.subr.bf16.mxu1 %v227_v7  ;;  %v228_v8 = vld [vmem:[%s300_s3] sm:$0xff]  }
   0x4   :  { %219 = vmatpush3.bf16.msra.mxu1 %v227_v7  ;;  %v196_v11 = vld [vmem:[%s301_s2] ss:$0 sm:$0xff] }
   0x5   :  { %214 = vmatprep.mubr.msk.bf16.mxu0 %vm42_vm0, %v25_v4  ;;  %220 = vmatprep.subr.bf16.mxu1 %v228_v8  ;;  %v200_v24 = vld [vmem:[%s302_s4] ss:$0 sm:$0xff] }
   0x6   :  { %215 = vmatmul.mubr.msk.bf16.vlgmr.msra.gmra.mxu0 %vm42_vm0, %v26_v6 }
   0x8   :  { %221 = vmatpush3.bf16.msra.mxu1 %v228_v8 }
  0xc6   :  { %v216_v9 = vpop.f32.mrf.mxu0 }
  0xc7   :  { %v92_v15 = vadd.f32 %v216_v9, %v196_v11 }
  0xc8   :  { %v83_v10 = vpop.f32.mrf.mxu0 }
  0xc9   :  { %v84_v13 = vadd.f32 %v196_v11, %v83_v10  ;;  %v100_v21 = vmax.f32 %v92_v15, 0.0 }
  0xca   :  { %v217_v12 = vpop.f32.mrf.mxu0 }
  0xcb   :  { %v95_v14 = vadd.f32 %v217_v12, %v196_v11  ;;  %v98_v19 = vmax.f32 %v84_v13, 0.0 }
  0xcc   :  { %v86_v16 = vpop.f32.mrf.mxu0 }
  0xcd   :  { %v87_v17 = vadd.f32 %v196_v11, %v86_v16  ;;  %v101_v18 = vmax.f32 %v95_v14, 0.0 }
  0xcf   :  { %v99_v20 = vmax.f32 %v87_v17, 0.0  ;;  %v103_v23 = vpack.c.bf16 %v101_v18, %v100_v21 }
  0xd1   :  { %v102_v22 = vpack.c.bf16 %v99_v20, %v98_v19 }
  0xd3   :  { %222 = vmatprep.mubr.msk.bf16.mxu1 %vm127_vm1, %v102_v22 }
  0xd4   :  { %223 = vmatmul.mubr.msk.bf16.vlgmr.msra.gmra.mxu1 %vm127_vm1, %v103_v23 }
 0x194   :  { %v224_v25 = vpop.f32.mrf.mxu1 }
 0x195   :  { %v177_v26 = vadd.f32 %v224_v25, %v200_v24 }
 0x196   :  { %v168_v27 = vpop.f32.mrf.mxu1 }
 0x197   :  { %v185_v28 = vmax.f32 %v177_v26, 0.0  ;;  %v169_v29 = vadd.f32 %v200_v24, %v168_v27 }
 0x198   :  { %v225_v30 = vpop.f32.mrf.mxu1 }
 0x199   :  { %190 = vst.msk [vmem:[%s303_s5 + $0x10] sm:$0xff] %vm187_vm2, %v185_v28  ;;  %v183_v31 = vmax.f32 %v169_v29, 0.0  ;;  %v180_v32 = vadd.f32 %v225_v30, %v200_v24 }
 0x19a   :  { %v171_v33 = vpop.f32.mrf.mxu1 }
 0x19b   :  { %188 = vst.msk [vmem:[%s303_s5] sm:$0xff] %vm187_vm2, %v183_v31  ;;  %v186_v34 = vmax.f32 %v180_v32, 0.0  ;;  %v172_v35 = vadd.f32 %v200_v24, %v171_v33 }
 0x19d   :  { %191 = vst.msk [vmem:[%s303_s5 + $0x18] sm:$0xff] %vm187_vm2, %v186_v34  ;;  %v184_v36 = vmax.f32 %v172_v35, 0.0 }
 0x19f   :  { %189 = vst.msk [vmem:[%s303_s5 + $0x8] sm:$0xff] %vm187_vm2, %v184_v36 }

</bundles_post_ra>
